<compile_context>
chip_gen: v7x
topology: tpu7x:2x2x1
jax: 0.10.0
libtpu: 0.0.40
codegen_flags: <defaults>
</compile_context>

<pallas_src>
import functools

import jax
import jax.numpy as jnp
from jax import lax
from jax.experimental import pallas as pl
from jax.experimental.pallas import tpu as pltpu


def _round_up(x, m):
    return ((x + m - 1) // m) * m


def _label_smoothing_kernel(logits_ref, target_ref, tgt_logit_ref, loss_ref,
                            m_ref, se_ref, sx_ref,
                            *, smoothing, ignore_index, vocab_size, tile_v,
                            n_vj, vocab_ragged):
    vj = pl.program_id(1)

    # ---- init online-logsumexp state at the first vocab tile of each row tile ----
    @pl.when(vj == 0)
    def _():
        m_ref[...] = jnp.full_like(m_ref, -jnp.inf)
        se_ref[...] = jnp.zeros_like(se_ref)
        sx_ref[...] = jnp.zeros_like(sx_ref)

    x = logits_ref[...].astype(jnp.float32)              # (tile_n, tile_v)

    def accumulate(x_max, x_sum):
        # online logsumexp + running sum(x); no full logp tile materialized
        m_prev = m_ref[...]
        m_new = jnp.maximum(m_prev, jnp.max(x_max, axis=-1, keepdims=True))
        p = jnp.exp(x_max - m_new)                        # (tile_n, tile_v)
        se_ref[...] = se_ref[...] * jnp.exp(m_prev - m_new) + \
            jnp.sum(p, axis=-1, keepdims=True)
        sx_ref[...] += jnp.sum(x_sum, axis=-1, keepdims=True)
        m_ref[...] = m_new

    if vocab_ragged:
        # Only the last vocab tile can contain out-of-range (garbage) lanes.
        rem = vocab_size - (n_vj - 1) * tile_v            # static # valid cols

        @pl.when(vj < n_vj - 1)
        def _():
            accumulate(x, x)

        @pl.when(vj == n_vj - 1)
        def _():
            col = lax.broadcasted_iota(jnp.int32, x.shape, 1)   # tile-local
            valid = col < rem
            accumulate(jnp.where(valid, x, -jnp.inf),     # pad lanes: exp -> 0
                       jnp.where(valid, x, 0.0))          # pad lanes: sum += 0
    else:
        accumulate(x, x)

    # ---- finalize: per-token smoothed NLL ----
    @pl.when(vj == n_vj - 1)
    def _():
        lse = m_ref[...] + jnp.log(se_ref[...])            # (tile_n, 1)
        tgt = target_ref[...]                              # (tile_n, 1) int32
        tgt_lp = tgt_logit_ref[...].astype(jnp.float32) - lse   # log p[target]
        mean_lp = sx_ref[...] * (1.0 / vocab_size) - lse   # mean_v log p[v]
        non_pad = (tgt != ignore_index).astype(jnp.float32)
        smoothed = (1.0 - smoothing) * tgt_lp + smoothing * mean_lp
        loss_ref[...] = -smoothed * non_pad


def label_smoothing_loss(output, target, *, smoothing=0.1, ignore_index=0,
                         reduction='mean', tile_n=256, tile_v=8192):
    """output: [B, S, V] logits (f32 or bf16), target: [B, S] int indices."""
    B, S, V = output.shape
    N = B * S

    logits = output.reshape(N, V)                 # keep input dtype (bf16 ok)
    tgt = target.reshape(N, 1).astype(jnp.int32)
    # Hoist the x[target] gather out of the streaming loop: N values, tiny HBM.
    tgt_logit = jnp.take_along_axis(logits, tgt, axis=-1).astype(jnp.float32)

    # Tile sizes: tokens -> sublanes (mult of 16 covers bf16 packing),
    # vocab -> lanes (mult of 128). Shrink for small inputs; no array padding.
    tile_n = max(16, min(_round_up(int(tile_n), 16), _round_up(N, 16)))
    if pl.cdiv(N, tile_n) < 2 and N > 16:
        # keep >= 2 token tiles so the "parallel" axis shards across both TCs
        tile_n = max(16, _round_up(pl.cdiv(N, 2), 16))
    tile_v = max(128, min(_round_up(int(tile_v), 128), _round_up(V, 128)))

    grid = (pl.cdiv(N, tile_n), pl.cdiv(V, tile_v))
    n_vj = int(grid[1])
    vocab_ragged = (V % tile_v) != 0

    kernel = functools.partial(
        _label_smoothing_kernel,
        smoothing=float(smoothing), ignore_index=int(ignore_index),
        vocab_size=int(V), tile_v=int(tile_v), n_vj=n_vj,
        vocab_ragged=vocab_ragged)

    loss_tok = pl.pallas_call(
        kernel,
        out_shape=jax.ShapeDtypeStruct((N, 1), jnp.float32),
        grid=grid,
        in_specs=[
            pl.BlockSpec((tile_n, tile_v), lambda i, vj: (i, vj)),
            pl.BlockSpec((tile_n, 1), lambda i, vj: (i, 0)),
            pl.BlockSpec((tile_n, 1), lambda i, vj: (i, 0)),
        ],
        out_specs=pl.BlockSpec((tile_n, 1), lambda i, vj: (i, 0)),
        scratch_shapes=[
            pltpu.VMEM((tile_n, 1), jnp.float32),   # running max m
            pltpu.VMEM((tile_n, 1), jnp.float32),   # running sum(exp(x - m))
            pltpu.VMEM((tile_n, 1), jnp.float32),   # running sum(x)
        ],
        compiler_params=pltpu.CompilerParams(
            dimension_semantics=("parallel", "arbitrary"),
            vmem_limit_bytes=48 * 1024 * 1024),
    )(logits, tgt, tgt_logit)

    loss_flat = loss_tok[:, 0]
    if reduction == 'none':
        return loss_flat.reshape(B, S)
    loss_sum = loss_flat.sum()
    if reduction == 'sum':
        return loss_sum
    # 'mean': divide by number of non-pad tokens (matches the PyTorch module;
    # an all-padding batch yields NaN, same as the reference).
    n_tokens = (target != ignore_index).sum().astype(jnp.float32)
    return loss_sum / n_tokens


def _reference(output, target, smoothing=0.1, ignore_index=0, reduction='mean'):
    logp = jax.nn.log_softmax(output.astype(jnp.float32), axis=-1)
    non_pad = (target != ignore_index).astype(jnp.float32)
    tgt_lp = jnp.take_along_axis(logp, target[..., None].astype(jnp.int32),
                                 axis=-1)[..., 0]
    smoothed = (1.0 - smoothing) * tgt_lp + smoothing * logp.mean(axis=-1)
    loss = -smoothed * non_pad
    if reduction == 'none':
        return loss
    if reduction == 'sum':
        return loss.sum()
    return loss.sum() / non_pad.sum()


if __name__ == "__main__":
    key = jax.random.PRNGKey(0)
    k1, k2, k3, k4 = jax.random.split(key, 4)

    # --- case 1: B=2, S=64, V=128, f32; 'mean' and 'none' (V tile-aligned) ---
    B, S, V = 2, 64, 128
    logits = jax.random.normal(k1, (B, S, V), dtype=jnp.float32)
    target = jax.random.randint(k2, (B, S), 0, V, dtype=jnp.int32)
    target = target.at[:, -4:].set(0)          # ensure some padding tokens

    out_mean = jax.block_until_ready(label_smoothing_loss(logits, target))
    ref_mean = _reference(logits, target)
    assert jnp.allclose(out_mean, ref_mean, rtol=1e-5, atol=1e-5), (out_mean, ref_mean)

    out_none = jax.block_until_ready(
        label_smoothing_loss(logits, target, reduction='none'))
    ref_none = _reference(logits, target, reduction='none')
    assert jnp.allclose(out_none, ref_none, rtol=1e-5, atol=1e-5)

    # --- case 2: ragged N and V + multi-step vocab tiling (online LSE,
    #             last-tile-only lane masking, masked OOB rows) ---
    B2, S2, V2 = 2, 50, 200
    logits2 = jax.random.normal(k3, (B2, S2, V2), dtype=jnp.float32)
    target2 = jax.random.randint(k4, (B2, S2), 0, V2, dtype=jnp.int32)
    target2 = target2.at[:, :3].set(0)
    out2 = jax.block_until_ready(
        label_smoothing_loss(logits2, target2, reduction='sum', tile_v=128))
    ref2 = _reference(logits2, target2, reduction='sum')
    assert jnp.allclose(out2, ref2, rtol=1e-5, atol=1e-3), (out2, ref2)

    # single ragged vocab tile path
    out2b = jax.block_until_ready(label_smoothing_loss(logits2, target2))
    ref2b = _reference(logits2, target2)
    assert jnp.allclose(out2b, ref2b, rtol=1e-5, atol=1e-5), (out2b, ref2b)

    # --- case 3: bf16 logits (kernel reads bf16 from HBM, computes in f32) ---
    logits_bf16 = logits.astype(jnp.bfloat16)
    out3 = jax.block_until_ready(label_smoothing_loss(logits_bf16, target))
    ref3 = _reference(logits_bf16.astype(jnp.float32), target)
    assert jnp.allclose(out3, ref3, rtol=1e-4, atol=1e-4), (out3, ref3)

    print("KERNEL_OK")
</pallas_src>

<mosaic_0001>
module attributes {stable_mosaic.version = 11 : i64} {
  func.func @_label_smoothing_kernel(%arg0: i32, %arg1: i32, %arg2: memref<64x128xf32, #tpu.memory_space<vmem>>, %arg3: memref<64x1xi32, #tpu.memory_space<vmem>>, %arg4: memref<64x1xf32, #tpu.memory_space<vmem>>, %arg5: memref<64x1xf32, #tpu.memory_space<vmem>>, %arg6: memref<64x1xf32, #tpu.memory_space<vmem>>, %arg7: memref<64x1xf32, #tpu.memory_space<vmem>>, %arg8: memref<64x1xf32, #tpu.memory_space<vmem>>) attributes {dimension_semantics = [#tpu.dimension_semantics<parallel>, #tpu.dimension_semantics<arbitrary>], iteration_bounds = array<i64: 2, 1>, scalar_prefetch = 0 : i64, scratch_operands = 3 : i64, tpu.core_type = #tpu.core_type<tc>, window_params = [{transform_indices = @transform_0, window_bounds = array<i64: 64, 128>}, {transform_indices = @transform_1, window_bounds = array<i64: 64, 1>}, {transform_indices = @transform_2, window_bounds = array<i64: 64, 1>}, {transform_indices = @transform_3, window_bounds = array<i64: 64, 1>}]} {
    %c0_i32 = arith.constant 0 : i32
    %0 = arith.cmpi eq, %arg1, %c0_i32 : i32
    %1 = arith.extui %0 : i1 to i32
    %c0_i32_0 = arith.constant 0 : i32
    %2 = arith.cmpi ne, %1, %c0_i32_0 : i32
    scf.if %2 {
      %cst_18 = arith.constant 0xFF800000 : f32
      %28 = vector.broadcast %cst_18 : f32 to vector<64x1xf32>
      %c0_19 = arith.constant 0 : index
      %c0_20 = arith.constant 0 : index
      %29 = vector.load %arg6[%c0_19, %c0_20] : memref<64x1xf32, #tpu.memory_space<vmem>>, vector<64x1xf32>
      tpu.vector_store %arg6[%c0_19, %c0_20], %28 {strides = array<i32>} : memref<64x1xf32, #tpu.memory_space<vmem>>, vector<64x1xf32>,
      %cst_21 = arith.constant 0.000000e+00 : f32
      %30 = vector.broadcast %cst_21 : f32 to vector<64x1xf32>
      %c0_22 = arith.constant 0 : index
      %c0_23 = arith.constant 0 : index
      %31 = vector.load %arg7[%c0_22, %c0_23] : memref<64x1xf32, #tpu.memory_space<vmem>>, vector<64x1xf32>
      tpu.vector_store %arg7[%c0_22, %c0_23], %30 {strides = array<i32>} : memref<64x1xf32, #tpu.memory_space<vmem>>, vector<64x1xf32>,
      %cst_24 = arith.constant 0.000000e+00 : f32
      %32 = vector.broadcast %cst_24 : f32 to vector<64x1xf32>
      %c0_25 = arith.constant 0 : index
      %c0_26 = arith.constant 0 : index
      %33 = vector.load %arg8[%c0_25, %c0_26] : memref<64x1xf32, #tpu.memory_space<vmem>>, vector<64x1xf32>
      tpu.vector_store %arg8[%c0_25, %c0_26], %32 {strides = array<i32>} : memref<64x1xf32, #tpu.memory_space<vmem>>, vector<64x1xf32>,
    } else {
    }
    %c0 = arith.constant 0 : index
    %c0_1 = arith.constant 0 : index
    %3 = vector.load %arg2[%c0, %c0_1] : memref<64x128xf32, #tpu.memory_space<vmem>>, vector<64x128xf32>
    %c0_2 = arith.constant 0 : index
    %c0_3 = arith.constant 0 : index
    %4 = vector.load %arg6[%c0_2, %c0_3] : memref<64x1xf32, #tpu.memory_space<vmem>>, vector<64x1xf32>
    %cst = arith.constant dense<0xFF800000> : vector<64xf32>
    %5 = vector.multi_reduction <maximumf>, %3, %cst [1] : vector<64x128xf32> to vector<64xf32>
    %6 = vector.shape_cast %5 : vector<64xf32> to vector<64x1xf32>
    %7 = arith.maximumf %4, %6 : vector<64x1xf32>
    %8 = vector.broadcast %7 : vector<64x1xf32> to vector<64x128xf32>
    %9 = arith.subf %3, %8 : vector<64x128xf32>
    %10 = math.exp %9 : vector<64x128xf32>
    %c0_4 = arith.constant 0 : index
    %c0_5 = arith.constant 0 : index
    %11 = vector.load %arg7[%c0_4, %c0_5] : memref<64x1xf32, #tpu.memory_space<vmem>>, vector<64x1xf32>
    %12 = arith.subf %4, %7 : vector<64x1xf32>
    %13 = math.exp %12 : vector<64x1xf32>
    %14 = arith.mulf %11, %13 : vector<64x1xf32>
    %cst_6 = arith.constant dense<0.000000e+00> : vector<64xf32>
    %15 = vector.multi_reduction <add>, %10, %cst_6 [1] : vector<64x128xf32> to vector<64xf32>
    %16 = vector.shape_cast %15 : vector<64xf32> to vector<64x1xf32>
    %17 = arith.addf %14, %16 : vector<64x1xf32>
    %c0_7 = arith.constant 0 : index
    %c0_8 = arith.constant 0 : index
    %18 = vector.load %arg7[%c0_7, %c0_8] : memref<64x1xf32, #tpu.memory_space<vmem>>, vector<64x1xf32>
    tpu.vector_store %arg7[%c0_7, %c0_8], %17 {strides = array<i32>} : memref<64x1xf32, #tpu.memory_space<vmem>>, vector<64x1xf32>,
    %c0_9 = arith.constant 0 : index
    %c0_10 = arith.constant 0 : index
    %19 = vector.load %arg8[%c0_9, %c0_10] : memref<64x1xf32, #tpu.memory_space<vmem>>, vector<64x1xf32>
    %cst_11 = arith.constant dense<0.000000e+00> : vector<64xf32>
    %20 = vector.multi_reduction <add>, %3, %cst_11 [1] : vector<64x128xf32> to vector<64xf32>
    %21 = vector.shape_cast %20 : vector<64xf32> to vector<64x1xf32>
    %22 = arith.addf %19, %21 : vector<64x1xf32>
    %c0_12 = arith.constant 0 : index
    %c0_13 = arith.constant 0 : index
    %23 = vector.load %arg8[%c0_12, %c0_13] : memref<64x1xf32, #tpu.memory_space<vmem>>, vector<64x1xf32>
    tpu.vector_store %arg8[%c0_12, %c0_13], %22 {strides = array<i32>} : memref<64x1xf32, #tpu.memory_space<vmem>>, vector<64x1xf32>,
    %c0_14 = arith.constant 0 : index
    %c0_15 = arith.constant 0 : index
    %24 = vector.load %arg6[%c0_14, %c0_15] : memref<64x1xf32, #tpu.memory_space<vmem>>, vector<64x1xf32>
    tpu.vector_store %arg6[%c0_14, %c0_15], %7 {strides = array<i32>} : memref<64x1xf32, #tpu.memory_space<vmem>>, vector<64x1xf32>,
    %c0_i32_16 = arith.constant 0 : i32
    %25 = arith.cmpi eq, %arg1, %c0_i32_16 : i32
    %26 = arith.extui %25 : i1 to i32
    %c0_i32_17 = arith.constant 0 : i32
    %27 = arith.cmpi ne, %26, %c0_i32_17 : i32
    scf.if %27 {
      %c0_18 = arith.constant 0 : index
      %c0_19 = arith.constant 0 : index
      %28 = vector.load %arg6[%c0_18, %c0_19] : memref<64x1xf32, #tpu.memory_space<vmem>>, vector<64x1xf32>
      %c0_20 = arith.constant 0 : index
      %c0_21 = arith.constant 0 : index
      %29 = vector.load %arg7[%c0_20, %c0_21] : memref<64x1xf32, #tpu.memory_space<vmem>>, vector<64x1xf32>
      %30 = math.log %29 : vector<64x1xf32>
      %31 = arith.addf %28, %30 : vector<64x1xf32>
      %c0_22 = arith.constant 0 : index
      %c0_23 = arith.constant 0 : index
      %32 = vector.load %arg3[%c0_22, %c0_23] : memref<64x1xi32, #tpu.memory_space<vmem>>, vector<64x1xi32>
      %c0_24 = arith.constant 0 : index
      %c0_25 = arith.constant 0 : index
      %33 = vector.load %arg4[%c0_24, %c0_25] : memref<64x1xf32, #tpu.memory_space<vmem>>, vector<64x1xf32>
      %34 = arith.subf %33, %31 : vector<64x1xf32>
      %c0_26 = arith.constant 0 : index
      %c0_27 = arith.constant 0 : index
      %35 = vector.load %arg8[%c0_26, %c0_27] : memref<64x1xf32, #tpu.memory_space<vmem>>, vector<64x1xf32>
      %cst_28 = arith.constant 7.812500e-03 : f32
      %36 = vector.broadcast %cst_28 : f32 to vector<64x1xf32>
      %37 = arith.mulf %35, %36 : vector<64x1xf32>
      %38 = arith.subf %37, %31 : vector<64x1xf32>
      %c0_i32_29 = arith.constant 0 : i32
      %39 = vector.broadcast %c0_i32_29 : i32 to vector<64x1xi32>
      %40 = arith.cmpi ne, %32, %39 : vector<64x1xi32>
      %41 = arith.extui %40 : vector<64x1xi1> to vector<64x1xi32>
      %42 = arith.sitofp %41 : vector<64x1xi32> to vector<64x1xf32>
      %cst_30 = arith.constant 0.899999976 : f32
      %43 = vector.broadcast %cst_30 : f32 to vector<64x1xf32>
      %44 = arith.mulf %43, %34 : vector<64x1xf32>
      %cst_31 = arith.constant 1.000000e-01 : f32
      %45 = vector.broadcast %cst_31 : f32 to vector<64x1xf32>
      %46 = arith.mulf %45, %38 : vector<64x1xf32>
      %47 = arith.addf %44, %46 : vector<64x1xf32>
      %cst_32 = arith.constant 0.000000e+00 : f32
      %48 = vector.broadcast %cst_32 : f32 to vector<64x1xf32>
      %49 = arith.subf %48, %47 : vector<64x1xf32>
      %50 = arith.mulf %49, %42 : vector<64x1xf32>
      %c0_33 = arith.constant 0 : index
      %c0_34 = arith.constant 0 : index
      %51 = vector.load %arg5[%c0_33, %c0_34] : memref<64x1xf32, #tpu.memory_space<vmem>>, vector<64x1xf32>
      tpu.vector_store %arg5[%c0_33, %c0_34], %50 {strides = array<i32>} : memref<64x1xf32, #tpu.memory_space<vmem>>, vector<64x1xf32>,
    } else {
    }
    return
  }
  func.func @transform_0(%arg0: i32, %arg1: i32) -> (i32, i32) {
    %c0_i32 = arith.constant 0 : i32
    return %arg0, %arg1 : i32, i32
  }
  func.func @transform_1(%arg0: i32, %arg1: i32) -> (i32, i32) {
    %c0_i32 = arith.constant 0 : i32
    %c0_i32_0 = arith.constant 0 : i32
    return %arg0, %c0_i32 : i32, i32
  }
  func.func @transform_2(%arg0: i32, %arg1: i32) -> (i32, i32) {
    %c0_i32 = arith.constant 0 : i32
    %c0_i32_0 = arith.constant 0 : i32
    return %arg0, %c0_i32 : i32, i32
  }
  func.func @transform_3(%arg0: i32, %arg1: i32) -> (i32, i32) {
    %c0_i32 = arith.constant 0 : i32
    %c0_i32_0 = arith.constant 0 : i32
    return %arg0, %c0_i32 : i32, i32
  }
}

</mosaic_0001>

<bundles_post_ra>
// kernel: tpu_custom_call.1
= control target key start
LH: loop header
LB: loop body
LE: loop exit
PB: predicated region body
PF: predicated region fallthrough
CT: control target
= control target key end

     0   :  { %s897_s12 = smov 0   ;;  %s899_s13 = smov 0   ;;  %s1201_s0 = inlined_call_operand.vmem [shape: f32[128,128], index: 0, kind: input, shape index: {}]   ;;  %s1202_s1 = inlined_call_operand.vmem [shape: s32[128,1], index: 1, kind: input, shape index: {}]   ;;  %s1203_s2 = inlined_call_operand.vmem [shape: f32[128,1], index: 2, kind: input, shape index: {}]   ;;  %s1204_s3 = inlined_call_operand.vmem [shape: f32[128,1], index: 3, kind: output, shape index: {}]  }
   0x1   :  { %s901_s14 = smov 0  }
   0x2 LB: > { %s25_s15 = sadd.s32 1, %s868_s13  ;;  %p754_p0 = scmp.ge.s32.totalorder %s872_s14, 1  ;;  %s872_s14 = sphi %s901_s14, %s13_s14   ;;  %s868_s13 = sphi %s899_s13, %s1207_s13   ;;  %s864_s12 = sphi %s897_s12, %s1206_s12  }
   0x3   : > { %p27_p1 = scmp.ge.s32.totalorder %s25_s15, 2  ;;  %p177_p2 = scmp.lt.s32.totalorder %s872_s14, 3 }
   0x5   : > { %s1209_s15 = smov (%p27_p1, %s25_s15), 0  ;;  %p178_p3 = pnand %p754_p0, %p177_p2 }
   0x6   : > { %s755_s16 = sshll.u32 (!%p178_p3), %s864_s12, 3  ;;  %vm245_vm0 = vcmask (!%p178_p3), 7168   ;;  %v874_v0 = vmov (!%p178_p3), -inf   ;;  %v875_v1 = vmov (!%p178_p3), 0.0   ;;  %v876_v26 = vmov (!%p178_p3), 0  }
   0x7   : > { %181 = sbr.rel (%p178_p3) target bundleno = 515 (0x203), region = 32  ;;  %p918_p4 = scmp.lt.s32.totalorder (!%p178_p3), %s755_s16, 15  ;;  %246 = vst.msk [vmem:[#allocation2] sm:$0xff] (!%p178_p3), %vm245_vm0, %v874_v0  ;;  %247 = vst.msk [vmem:[#allocation2 + $0x8] sm:$0xff] (!%p178_p3), %vm245_vm0, %v874_v0  ;;  %800 = vset.pattern.permute.xlu0 (!%p178_p3), %v876_v26  ;;  %801 = vset.pattern.permute.xlu1 (!%p178_p3), %v876_v26 }
   0x8   : > { %248 = vst.msk [vmem:[#allocation2 + $0x10] sm:$0xff] (!%p178_p3), %vm245_vm0, %v874_v0  ;;  %249 = vst.msk [vmem:[#allocation2 + $0x18] sm:$0xff] (!%p178_p3), %vm245_vm0, %v874_v0 }
   0x9   : > { %250 = vst.msk [vmem:[#allocation2 + $0x20] sm:$0xff] (!%p178_p3), %vm245_vm0, %v874_v0  ;;  %251 = vst.msk [vmem:[#allocation2 + $0x28] sm:$0xff] (!%p178_p3), %vm245_vm0, %v874_v0 }
   0xa   : > { %252 = vst.msk [vmem:[#allocation2 + $0x30] sm:$0xff] (!%p178_p3), %vm245_vm0, %v874_v0  ;;  %253 = vst.msk [vmem:[#allocation2 + $0x38] sm:$0xff] (!%p178_p3), %vm245_vm0, %v874_v0 }
   0xb   : > { %254 = vst.msk [vmem:[#allocation3] sm:$0xff] (!%p178_p3), %vm245_vm0, %v875_v1  ;;  %255 = vst.msk [vmem:[#allocation3 + $0x8] sm:$0xff] (!%p178_p3), %vm245_vm0, %v875_v1 }
   0xc   : > { %256 = vst.msk [vmem:[#allocation3 + $0x10] sm:$0xff] (!%p178_p3), %vm245_vm0, %v875_v1  ;;  %257 = vst.msk [vmem:[#allocation3 + $0x18] sm:$0xff] (!%p178_p3), %vm245_vm0, %v875_v1 }
   0xd   : > { %258 = vst.msk [vmem:[#allocation3 + $0x20] sm:$0xff] (!%p178_p3), %vm245_vm0, %v875_v1  ;;  %259 = vst.msk [vmem:[#allocation3 + $0x28] sm:$0xff] (!%p178_p3), %vm245_vm0, %v875_v1 }
   0xe   : > { %260 = vst.msk [vmem:[#allocation3 + $0x30] sm:$0xff] %vm245_vm0, %v875_v1  ;;  %261 = vst.msk [vmem:[#allocation3 + $0x38] sm:$0xff] %vm245_vm0, %v875_v1  ;;  %s1211_s16 = smov (!%p918_p4, %s755_s16), 15  ;;  %v1008_v27 = vld [vmem:[#allocation2] sm:$0xff]  ;;  %v1018_v31 = vld [vmem:[#allocation2 + $0x8] sm:$0xff] }
   0xf   : > { %262 = vst.msk [vmem:[#allocation4] sm:$0xff] %vm245_vm0, %v875_v1  ;;  %263 = vst.msk [vmem:[#allocation4 + $0x8] sm:$0xff] %vm245_vm0, %v875_v1  ;;  %s948_s18 = sshll.u32 %s1211_s16, 3  ;;  %v1020_v32 = vld [vmem:[#allocation2 + $0x10] sm:$0xff]  ;;  %v1028_v37 = vld [vmem:[#allocation2 + $0x18] sm:$0xff] }
  0x10   : > { %264 = vst.msk [vmem:[#allocation4 + $0x10] sm:$0xff] %vm245_vm0, %v875_v1  ;;  %265 = vst.msk [vmem:[#allocation4 + $0x18] sm:$0xff] %vm245_vm0, %v875_v1  ;;  %s954_s21 = scalar_lea.vmem %s1201_s0, %s948_s18  ;;  %s227_s24 = scalar_lea.vmem %s1202_s1, %s948_s18  ;;  %v1030_v38 = vld [vmem:[#allocation2 + $0x20] sm:$0xff]  ;;  %v1047_v45 = vld [vmem:[#allocation2 + $0x28] sm:$0xff] }
  0x11   : > { %266 = vst.msk [vmem:[#allocation4 + $0x20] sm:$0xff] %vm245_vm0, %v875_v1  ;;  %267 = vst.msk [vmem:[#allocation4 + $0x28] sm:$0xff] %vm245_vm0, %v875_v1  ;;  %v961_v2 = vld [vmem:[%s954_s21] sm:$0xff]  ;;  %v539_v4 = vld [vmem:[%s227_s24 + $0x8] sm:$0xff]  ;;  %s1141_s27 = scalar_lea.vmem %s1203_s2, %s948_s18  ;;  %s1163_s30 = scalar_lea.vmem %s1204_s3, %s948_s18 }
  0x12   : > { %268 = vst.msk [vmem:[#allocation4 + $0x30] sm:$0xff] %vm245_vm0, %v875_v1  ;;  %269 = vst.msk [vmem:[#allocation4 + $0x38] sm:$0xff] %vm245_vm0, %v875_v1  ;;  %v538_v3 = vld [vmem:[%s227_s24] sm:$0xff]  ;;  %v540_v5 = vld [vmem:[%s227_s24 + $0x10] sm:$0xff]  ;;  %vm587_vm2 = vcmp.ne.s32.totalorder %v539_v4, 0  ;;  %286 = vmax.xlane.f32.xlu0 %v961_v2 }
  0x13   : > { %v541_v6 = vld [vmem:[%s227_s24 + $0x18] sm:$0xff]  ;;  %v542_v7 = vld [vmem:[%s227_s24 + $0x20] sm:$0xff]  ;;  %vm586_vm1 = vcmp.ne.s32.totalorder %v538_v3, 0  ;;  %v543_v8 = vld [vmem:[%s227_s24 + $0x28] sm:$0xff]  ;;  %vm588_vm3 = vcmp.ne.s32.totalorder %v540_v5, 0  ;;  %v966_v12 = vsel %vm587_vm2, 1.0, %v875_v1 }
  0x14   : > { %v544_v9 = vld [vmem:[%s227_s24 + $0x30] sm:$0xff]  ;;  %v545_v10 = vld [vmem:[%s227_s24 + $0x38] sm:$0xff]  ;;  %vm589_vm4 = vcmp.ne.s32.totalorder %v541_v6, 0  ;;  %vm590_vm5 = vcmp.ne.s32.totalorder %v542_v7, 0  ;;  %vm591_vm6 = vcmp.ne.s32.totalorder %v543_v8, 0  ;;  %v964_v11 = vsel %vm586_vm1, 1.0, %v875_v1 }
  0x15   : > { %vm592_vm7 = vcmp.ne.s32.totalorder %v544_v9, 0  ;;  %vm593_vm8 = vcmp.ne.s32.totalorder %v545_v10, 0  ;;  %v968_v13 = vsel %vm588_vm3, 1.0, %v875_v1  ;;  %v970_v14 = vsel %vm589_vm4, 1.0, %v875_v1  ;;  %v981_v19 = vld [vmem:[%s954_s21 + $0x8] sm:$0xff]  ;;  %v984_v20 = vld [vmem:[%s954_s21 + $0x10] sm:$0xff] }
  0x16   : > { %v972_v15 = vsel %vm590_vm5, 1.0, %v875_v1  ;;  %v974_v16 = vsel %vm591_vm6, 1.0, %v875_v1  ;;  %v976_v17 = vsel %vm592_vm7, 1.0, %v875_v1  ;;  %v978_v18 = vsel %vm593_vm8, 1.0, %v875_v1  ;;  %288 = vmax.xlane.f32.xlu0 %v981_v19  ;;  %290 = vmax.xlane.f32.xlu1 %v984_v20  ;;  %v989_v21 = vld [vmem:[%s954_s21 + $0x18] sm:$0xff]  ;;  %v992_v22 = vld [vmem:[%s954_s21 + $0x20] sm:$0xff] }
  0x17   : > { %v997_v23 = vld [vmem:[%s954_s21 + $0x28] sm:$0xff]  ;;  %v1000_v24 = vld [vmem:[%s954_s21 + $0x30] sm:$0xff]  ;;  %v1005_v25 = vld [vmem:[%s954_s21 + $0x38] sm:$0xff] }
  0x18   : > { %v1049_v46 = vld [vmem:[#allocation2 + $0x30] sm:$0xff]  ;;  %v1066_v53 = vld [vmem:[#allocation2 + $0x38] sm:$0xff] }
  0x1a   : > { %292 = vmax.xlane.f32.xlu1 %v989_v21  ;;  %294 = vmax.xlane.f32.xlu0 %v992_v22 }
  0x1e   : > { %296 = vmax.xlane.f32.xlu1 %v997_v23  ;;  %298 = vmax.xlane.f32.xlu0 %v1000_v24 }
  0x22   : > { %300 = vmax.xlane.f32.xlu1 %v1005_v25 }
  0x9f   : > { %v287_v28 = vpop.xlane.xlu0 %286 }
  0xa0   : > { %v1011_v29 = vmax.f32 %v1008_v27, %v287_v28 }
  0xa2   : > { %v382_v30 = vsub.f32 %v1008_v27, %v1011_v29  ;;  %487 = vst.msk [vmem:[#allocation2] sm:$0xff] %vm245_vm0, %v1011_v29  ;;  %312 = vperm.xlu0 %800, %v1011_v29  }
  0xa3   : > { %v289_v33 = vpop.xlane.xlu0 %288  ;;  %v291_v34 = vpop.xlane.xlu1 %290 }
  0xa4   : > { %v1023_v35 = vmax.f32 %v1018_v31, %v289_v33  ;;  %v1026_v36 = vmax.f32 %v1020_v32, %v291_v34 }
  0xa6   : > { %v383_v39 = vsub.f32 %v1018_v31, %v1023_v35  ;;  %488 = vst.msk [vmem:[#allocation2 + $0x8] sm:$0xff] %vm245_vm0, %v1023_v35  ;;  %317 = vperm.xlu1 %801, %v1023_v35   ;;  %v384_v40 = vsub.f32 %v1020_v32, %v1026_v36  ;;  %489 = vst.msk [vmem:[#allocation2 + $0x10] sm:$0xff] %vm245_vm0, %v1026_v36 }
  0xa7   : > { %v293_v41 = vpop.xlane.xlu1 %292  ;;  %v295_v42 = vpop.xlane.xlu0 %294 }
  0xa8   : > { %v1042_v43 = vmax.f32 %v1028_v37, %v293_v41  ;;  %v1045_v44 = vmax.f32 %v1030_v38, %v295_v42 }
  0xaa   : > { %322 = vperm.xlu1 %801, %v1026_v36   ;;  %v385_v47 = vsub.f32 %v1028_v37, %v1042_v43  ;;  %490 = vst.msk [vmem:[#allocation2 + $0x18] sm:$0xff] %vm245_vm0, %v1042_v43  ;;  %v386_v48 = vsub.f32 %v1030_v38, %v1045_v44  ;;  %491 = vst.msk [vmem:[#allocation2 + $0x20] sm:$0xff] %vm245_vm0, %v1045_v44  ;;  %v376_v37 = vld [vmem:[#allocation3 + $0x10] sm:$0xff] }
  0xab   : > { %v297_v49 = vpop.xlane.xlu1 %296  ;;  %v299_v50 = vpop.xlane.xlu0 %298 }
  0xac   : > { %v1061_v51 = vmax.f32 %v1047_v45, %v297_v49  ;;  %v1064_v52 = vmax.f32 %v1049_v46, %v299_v50 }
  0xae   : > { %327 = vperm.xlu1 %801, %v1042_v43   ;;  %v387_v54 = vsub.f32 %v1047_v45, %v1061_v51  ;;  %492 = vst.msk [vmem:[#allocation2 + $0x28] sm:$0xff] %vm245_vm0, %v1061_v51  ;;  %v388_v55 = vsub.f32 %v1049_v46, %v1064_v52  ;;  %493 = vst.msk [vmem:[#allocation2 + $0x30] sm:$0xff] %vm245_vm0, %v1064_v52 }
  0xaf   : > { %v301_v56 = vpop.xlane.xlu1 %300 }
  0xb0   : > { %v1078_v57 = vmax.f32 %v1066_v53, %v301_v56  ;;  %v400_v31 = vmul.f32 1.442695, %v387_v54  ;;  %v402_v38 = vmul.f32 1.442695, %v388_v55 }
  0xb2   : > { %332 = vperm.xlu1 %801, %v1045_v44   ;;  %v389_v58 = vsub.f32 %v1066_v53, %v1078_v57  ;;  %494 = vst.msk [vmem:[#allocation2 + $0x38] sm:$0xff] %vm245_vm0, %v1078_v57 }
  0xb4   : > { %v404_v45 = vmul.f32 1.442695, %v389_v58 }
  0xb6   : > { %337 = vperm.xlu1 %801, %v1061_v51  }
  0xba   : > { %342 = vperm.xlu1 %801, %v1064_v52  }
  0xbe   : > { %347 = vperm.xlu1 %801, %v1078_v57  }
 0x121   : > { %v313_v59 = vpop.permute.xlu0 %312 }
 0x122   : > { %v350_v60 = vsub.f32 %v961_v2, %v313_v59 }
 0x124   : > { %v358_v61 = vmul.f32 1.442695, %v350_v60 }
 0x125   : > { %v318_v62 = vpop.permute.xlu1 %317 }
 0x126   : > { %802 = vpow2.f32 %v358_v61  ;;  %v351_v63 = vsub.f32 %v981_v19, %v318_v62 }
 0x128   : > { %v360_v0 = vmul.f32 1.442695, %v351_v63 }
 0x129   : > { %v323_v1 = vpop.permute.xlu1 %322 }
 0x12a   : > { %804 = vpow2.f32 %v360_v0  ;;  %v352_v3 = vsub.f32 %v984_v20, %v323_v1 }
 0x12c   : > { %v362_v4 = vmul.f32 1.442695, %v352_v3 }
 0x12d   : > { %v328_v5 = vpop.permute.xlu1 %327 }
 0x12e   : > { %806 = vpow2.f32 %v362_v4  ;;  %v353_v7 = vsub.f32 %v989_v21, %v328_v5  ;;  %v390_v4 = vmul.f32 1.442695, %v382_v30  ;;  %v375_v30 = vld [vmem:[#allocation3 + $0x8] sm:$0xff] }
 0x130   : > { %v803_v6 = vpop.eup %802  ;;  %v364_v8 = vmul.f32 1.442695, %v353_v7 }
 0x131   : > { %414 = vadd.xlane.f32.xlu1 %v803_v6  ;;  %v333_v9 = vpop.permute.xlu1 %332  ;;  %v378_v6 = vld [vmem:[#allocation3 + $0x20] sm:$0xff] }
 0x132   : > { %808 = vpow2.f32 %v364_v8  ;;  %v354_v10 = vsub.f32 %v992_v22, %v333_v9 }
 0x134   : > { %v805_v26 = vpop.eup %804  ;;  %v366_v28 = vmul.f32 1.442695, %v354_v10  ;;  %v379_v10 = vld [vmem:[#allocation3 + $0x28] sm:$0xff] }
 0x135   : > { %416 = vadd.xlane.f32.xlu0 %v805_v26  ;;  %v338_v33 = vpop.permute.xlu1 %337 }
 0x136   : > { %810 = vpow2.f32 %v366_v28  ;;  %v355_v34 = vsub.f32 %v997_v23, %v338_v33  ;;  %v380_v33 = vld [vmem:[#allocation3 + $0x30] sm:$0xff] }
 0x138   : > { %v807_v41 = vpop.eup %806  ;;  %v368_v42 = vmul.f32 1.442695, %v355_v34 }
 0x139   : > { %418 = vadd.xlane.f32.xlu0 %v807_v41  ;;  %v343_v49 = vpop.permute.xlu1 %342 }
 0x13a   : > { %812 = vpow2.f32 %v368_v42  ;;  %v356_v50 = vsub.f32 %v1000_v24, %v343_v49 }
 0x13c   : > { %v809_v56 = vpop.eup %808  ;;  %v370_v59 = vmul.f32 1.442695, %v356_v50 }
 0x13d   : > { %v348_v60 = vpop.permute.xlu1 %347  ;;  %420 = vadd.xlane.f32.xlu1 %v809_v56  ;;  %v381_v56 = vld [vmem:[#allocation3 + $0x38] sm:$0xff] }
 0x13e   : > { %814 = vpow2.f32 %v370_v59  ;;  %v357_v61 = vsub.f32 %v1005_v25, %v348_v60 }
 0x140   : > { %v811_v62 = vpop.eup %810  ;;  %v372_v63 = vmul.f32 1.442695, %v357_v61  ;;  %v447_v61 = vld [vmem:[#allocation4] sm:$0xff] }
 0x141   : > { %422 = vadd.xlane.f32.xlu0 %v811_v62 }
 0x142   : > { %816 = vpow2.f32 %v372_v63 }
 0x143   : > { %818 = vpow2.f32 %v390_v4 }
 0x144   : > { %v813_v0 = vpop.eup %812 }
 0x145   : > { %424 = vadd.xlane.f32.xlu1 %v813_v0 }
 0x148   : > { %v815_v1 = vpop.eup %814 }
 0x149   : > { %426 = vadd.xlane.f32.xlu0 %v815_v1 }
 0x14c   : > { %v817_v3 = vpop.eup %816 }
 0x14d   : > { %455 = vadd.xlane.f32.xlu0 %v961_v2  ;;  %428 = vadd.xlane.f32.xlu1 %v817_v3  ;;  %v392_v2 = vmul.f32 1.442695, %v383_v39 }
 0x14f   : > { %820 = vpow2.f32 %v392_v2 }
 0x151   : > { %459 = vadd.xlane.f32.xlu0 %v984_v20  ;;  %457 = vadd.xlane.f32.xlu1 %v981_v19  ;;  %v394_v19 = vmul.f32 1.442695, %v384_v40  ;;  %v819_v20 = vpop.eup %818 }
 0x153   : > { %822 = vpow2.f32 %v394_v19 }
 0x155   : > { %463 = vadd.xlane.f32.xlu0 %v992_v22  ;;  %461 = vadd.xlane.f32.xlu1 %v989_v21  ;;  %v396_v21 = vmul.f32 1.442695, %v385_v47  ;;  %v374_v22 = vld [vmem:[#allocation3] sm:$0xff]  ;;  %v377_v47 = vld [vmem:[#allocation3 + $0x18] sm:$0xff] }
 0x157   : > { %824 = vpow2.f32 %v396_v21  ;;  %v449_v21 = vld [vmem:[#allocation4 + $0x10] sm:$0xff] }
 0x159   : > { %467 = vadd.xlane.f32.xlu0 %v1000_v24  ;;  %465 = vadd.xlane.f32.xlu1 %v997_v23  ;;  %v406_v23 = vmul.f32 %v819_v20, %v374_v22  ;;  %v398_v24 = vmul.f32 1.442695, %v386_v48  ;;  %v821_v29 = vpop.eup %820  ;;  %v448_v20 = vld [vmem:[#allocation4 + $0x8] sm:$0xff] }
 0x15a   : > { %v407_v32 = vmul.f32 %v821_v29, %v375_v30  ;;  %v498_v30 = vld [vmem:[#allocation2] sm:$0xff] }
 0x15b   : > { %826 = vpow2.f32 %v398_v24 }
 0x15c   : > { %828 = vpow2.f32 %v400_v31 }
 0x15d   : > { %469 = vadd.xlane.f32.xlu1 %v1005_v25  ;;  %v823_v35 = vpop.eup %822  ;;  %830 = vpow2.f32 %v402_v38  ;;  %v499_v38 = vld [vmem:[#allocation2 + $0x8] sm:$0xff] }
 0x15e   : > { %v408_v40 = vmul.f32 %v823_v35, %v376_v37  ;;  %832 = vpow2.f32 %v404_v45  ;;  %v450_v37 = vld [vmem:[#allocation4 + $0x18] sm:$0xff] }
 0x161   : > { %v825_v43 = vpop.eup %824 }
 0x162   : > { %v409_v51 = vmul.f32 %v825_v43, %v377_v47  ;;  %v546_v43 = vld [vmem:[%s1141_s27] sm:$0xff] }
 0x165   : > { %v827_v54 = vpop.eup %826 }
 0x166   : > { %v410_v55 = vmul.f32 %v827_v54, %v378_v6  ;;  %v829_v7 = vpop.eup %828  ;;  %v547_v54 = vld [vmem:[%s1141_s27 + $0x8] sm:$0xff] }
 0x167   : > { %v411_v57 = vmul.f32 %v829_v7, %v379_v10  ;;  %v831_v58 = vpop.eup %830  ;;  %v453_v10 = vld [vmem:[#allocation4 + $0x30] sm:$0xff] }
 0x168   : > { %v412_v42 = vmul.f32 %v831_v58, %v380_v33  ;;  %v833_v49 = vpop.eup %832 }
 0x169   : > { %v413_v62 = vmul.f32 %v833_v49, %v381_v56  ;;  %v549_v49 = vld [vmem:[%s1141_s27 + $0x18] sm:$0xff]  ;;  %v502_v56 = vld [vmem:[#allocation2 + $0x20] sm:$0xff] }
 0x1be   : > { %v415_v25 = vpop.xlane.xlu1 %414 }
 0x1bf   : > { %v430_v27 = vadd.f32 %v415_v25, %v406_v23 }
 0x1c1   : > { %439 = vst.msk [vmem:[#allocation3] sm:$0xff] %vm245_vm0, %v430_v27 }
 0x1c2   : > { %v417_v36 = vpop.xlane.xlu0 %416 }
 0x1c3   : > { %v431_v39 = vadd.f32 %v417_v36, %v407_v32 }
 0x1c5   : > { %440 = vst.msk [vmem:[#allocation3 + $0x8] sm:$0xff] %vm245_vm0, %v431_v39  ;;  %v451_v39 = vld [vmem:[#allocation4 + $0x20] sm:$0xff] }
 0x1c6   : > { %v419_v44 = vpop.xlane.xlu0 %418 }
 0x1c7   : > { %v432_v48 = vadd.f32 %v419_v44, %v408_v40 }
 0x1c8   : > { %v506_v52 = vld [vmem:[#allocation3] sm:$0xff] }
 0x1c9   : > { %441 = vst.msk [vmem:[#allocation3 + $0x10] sm:$0xff] %vm245_vm0, %v432_v48  ;;  %834 = vlog2.f32 %v506_v52  ;;  %v452_v52 = vld [vmem:[#allocation4 + $0x28] sm:$0xff] }
 0x1ca   : > { %v421_v5 = vpop.xlane.xlu1 %420 }
 0x1cb   : > { %v433_v46 = vadd.f32 %v421_v5, %v409_v51  ;;  %v500_v5 = vld [vmem:[#allocation2 + $0x10] sm:$0xff] }
 0x1cc   : > { %v507_v8 = vld [vmem:[#allocation3 + $0x8] sm:$0xff] }
 0x1cd   : > { %442 = vst.msk [vmem:[#allocation3 + $0x18] sm:$0xff] %vm245_vm0, %v433_v46  ;;  %836 = vlog2.f32 %v507_v8 }
 0x1ce   : > { %v423_v9 = vpop.xlane.xlu0 %422 }
 0x1cf   : > { %v434_v26 = vadd.f32 %v423_v9, %v410_v55 }
 0x1d0   : > { %v508_v53 = vld [vmem:[#allocation3 + $0x10] sm:$0xff] }
 0x1d1   : > { %443 = vst.msk [vmem:[#allocation3 + $0x20] sm:$0xff] %vm245_vm0, %v434_v26  ;;  %838 = vlog2.f32 %v508_v53  ;;  %v548_v26 = vld [vmem:[%s1141_s27 + $0x10] sm:$0xff]  ;;  %v501_v53 = vld [vmem:[#allocation2 + $0x18] sm:$0xff] }
 0x1d2   : > { %v425_v28 = vpop.xlane.xlu1 %424 }
 0x1d3   : > { %v435_v34 = vadd.f32 %v425_v28, %v411_v57  ;;  %v835_v63 = vpop.eup %834 }
 0x1d4   : > { %v509_v41 = vld [vmem:[#allocation3 + $0x18] sm:$0xff]  ;;  %v515_v23 = vmul.f32 0.6931472, %v835_v63 }
 0x1d5   : > { %840 = vlog2.f32 %v509_v41  ;;  %444 = vst.msk [vmem:[#allocation3 + $0x28] sm:$0xff] %vm245_vm0, %v435_v34 }
 0x1d6   : > { %v427_v50 = vpop.xlane.xlu0 %426  ;;  %v530_v40 = vadd.f32 %v515_v23, %v498_v30  ;;  %v504_v30 = vld [vmem:[#allocation2 + $0x30] sm:$0xff] }
 0x1d7   : > { %v436_v59 = vadd.f32 %v427_v50, %v412_v42  ;;  %v837_v3 = vpop.eup %836  ;;  %v550_v50 = vld [vmem:[%s1141_s27 + $0x20] sm:$0xff] }
 0x1d8   : > { %v510_v60 = vld [vmem:[#allocation3 + $0x20] sm:$0xff]  ;;  %v517_v24 = vmul.f32 0.6931472, %v837_v3  ;;  %v554_v57 = vsub.f32 %v546_v43, %v530_v40 }
 0x1d9   : > { %842 = vlog2.f32 %v510_v60  ;;  %445 = vst.msk [vmem:[#allocation3 + $0x30] sm:$0xff] %vm245_vm0, %v436_v59 }
 0x1da   : > { %v429_v0 = vpop.xlane.xlu1 %428  ;;  %v456_v1 = vpop.xlane.xlu0 %455  ;;  %v531_v47 = vadd.f32 %v517_v24, %v499_v38 }
 0x1db   : > { %v437_v4 = vadd.f32 %v429_v0, %v413_v62  ;;  %v471_v2 = vadd.f32 %v456_v1, %v447_v61  ;;  %v839_v22 = vpop.eup %838 }
 0x1dc   : > { %v511_v19 = vld [vmem:[#allocation3 + $0x28] sm:$0xff]  ;;  %v519_v35 = vmul.f32 0.6931472, %v839_v22  ;;  %v555_v28 = vsub.f32 %v547_v54, %v531_v47 }
 0x1dd   : > { %844 = vlog2.f32 %v511_v19  ;;  %446 = vst.msk [vmem:[#allocation3 + $0x38] sm:$0xff] %vm245_vm0, %v437_v4  ;;  %479 = vst.msk [vmem:[#allocation4] sm:$0xff] %vm245_vm0, %v471_v2  ;;  %v454_v4 = vld [vmem:[#allocation4 + $0x38] sm:$0xff]  ;;  %v610_v2 = vmul.f32 0.9, %v554_v57 }
 0x1de   : > { %v458_v25 = vpop.xlane.xlu1 %457  ;;  %v460_v27 = vpop.xlane.xlu0 %459  ;;  %v532_v9 = vadd.f32 %v519_v35, %v500_v5  ;;  %v611_v22 = vmul.f32 0.9, %v555_v28 }
 0x1df   : > { %v841_v29 = vpop.eup %840  ;;  %v472_v31 = vadd.f32 %v458_v25, %v448_v20  ;;  %v473_v32 = vadd.f32 %v460_v27, %v449_v21  ;;  %v551_v27 = vld [vmem:[%s1141_s27 + $0x28] sm:$0xff] }
 0x1e0   : > { %v512_v36 = vld [vmem:[#allocation3 + $0x30] sm:$0xff]  ;;  %v521_v44 = vmul.f32 0.6931472, %v841_v29  ;;  %v556_v0 = vsub.f32 %v548_v26, %v532_v9  ;;  %v503_v29 = vld [vmem:[#allocation2 + $0x28] sm:$0xff] }
 0x1e1   : > { %846 = vlog2.f32 %v512_v36  ;;  %480 = vst.msk [vmem:[#allocation4 + $0x8] sm:$0xff] %vm245_vm0, %v472_v31  ;;  %481 = vst.msk [vmem:[#allocation4 + $0x10] sm:$0xff] %vm245_vm0, %v473_v32 }
 0x1e2   : > { %v462_v48 = vpop.xlane.xlu1 %461  ;;  %v464_v45 = vpop.xlane.xlu0 %463  ;;  %v1150_v33 = vadd.f32 %v521_v44, %v501_v53 }
 0x1e3   : > { %v843_v51 = vpop.eup %842  ;;  %v474_v6 = vadd.f32 %v462_v48, %v450_v37  ;;  %v475_v46 = vadd.f32 %v464_v45, %v451_v39  ;;  %v612_v39 = vmul.f32 0.9, %v556_v0 }
 0x1e4   : > { %v523_v55 = vmul.f32 0.6931472, %v843_v51  ;;  %v513_v7 = vld [vmem:[#allocation3 + $0x38] sm:$0xff]  ;;  %v562_v8 = vld [vmem:[#allocation4] sm:$0xff]  ;;  %v557_v23 = vsub.f32 %v549_v49, %v1150_v33 }
 0x1e5   : > { %848 = vlog2.f32 %v513_v7  ;;  %v570_v58 = vmul.f32 0.0078125, %v562_v8  ;;  %482 = vst.msk [vmem:[#allocation4 + $0x18] sm:$0xff] %vm245_vm0, %v474_v6  ;;  %483 = vst.msk [vmem:[#allocation4 + $0x20] sm:$0xff] %vm245_vm0, %v475_v46 }
 0x1e6   : > { %v466_v34 = vpop.xlane.xlu1 %465  ;;  %v468_v41 = vpop.xlane.xlu0 %467  ;;  %v534_v3 = vadd.f32 %v523_v55, %v502_v56 }
 0x1e7   : > { %v845_v42 = vpop.eup %844  ;;  %v578_v59 = vsub.f32 %v570_v58, %v530_v40  ;;  %v476_v60 = vadd.f32 %v466_v34, %v452_v52  ;;  %v477_v61 = vadd.f32 %v468_v41, %v453_v10  ;;  %v552_v52 = vld [vmem:[%s1141_s27 + $0x30] sm:$0xff]  ;;  %v505_v34 = vld [vmem:[#allocation2 + $0x38] sm:$0xff] }
 0x1e8   : > { %v525_v62 = vmul.f32 0.6931472, %v845_v42  ;;  %v563_v63 = vld [vmem:[#allocation4 + $0x8] sm:$0xff]  ;;  %v564_v1 = vld [vmem:[#allocation4 + $0x10] sm:$0xff]  ;;  %v558_v40 = vsub.f32 %v550_v50, %v534_v3  ;;  %v553_v50 = vld [vmem:[%s1141_s27 + $0x38] sm:$0xff] }
 0x1e9   : > { %v618_v19 = vmul.f32 0.1, %v578_v59  ;;  %v571_v20 = vmul.f32 0.0078125, %v563_v63  ;;  %v572_v21 = vmul.f32 0.0078125, %v564_v1  ;;  %484 = vst.msk [vmem:[#allocation4 + $0x28] sm:$0xff] %vm245_vm0, %v476_v60  ;;  %485 = vst.msk [vmem:[#allocation4 + $0x30] sm:$0xff] %vm245_vm0, %v477_v61 }
 0x1ea   : > { %v470_v24 = vpop.xlane.xlu1 %469  ;;  %v535_v44 = vadd.f32 %v525_v62, %v503_v29  ;;  %v614_v26 = vmul.f32 0.9, %v558_v40 }
 0x1eb   : > { %v847_v25 = vpop.eup %846  ;;  %v626_v31 = vadd.f32 %v618_v19, %v610_v2  ;;  %v579_v32 = vsub.f32 %v571_v20, %v531_v47  ;;  %v580_v35 = vsub.f32 %v572_v21, %v532_v9  ;;  %v478_v36 = vadd.f32 %v470_v24, %v454_v4 }
 0x1ec   : > { %v527_v37 = vmul.f32 0.6931472, %v847_v25  ;;  %v565_v38 = vld [vmem:[#allocation4 + $0x18] sm:$0xff]  ;;  %v566_v43 = vld [vmem:[#allocation4 + $0x20] sm:$0xff]  ;;  %v613_v47 = vmul.f32 0.9, %v557_v23  ;;  %v559_v57 = vsub.f32 %v551_v27, %v535_v44 }
 0x1ed   : > { %v634_v48 = vsub.f32 0.0, %v626_v31  ;;  %v619_v45 = vmul.f32 0.1, %v579_v32  ;;  %v620_v51 = vmul.f32 0.1, %v580_v35  ;;  %v573_v54 = vmul.f32 0.0078125, %v565_v38 }
 0x1ee   : > { %486 = vst.msk [vmem:[#allocation4 + $0x38] sm:$0xff] %vm245_vm0, %v478_v36  ;;  %v574_v5 = vmul.f32 0.0078125, %v566_v43  ;;  %v536_v6 = vadd.f32 %v527_v37, %v504_v30 }
 0x1ef   : > { %v849_v46 = vpop.eup %848  ;;  %v642_v55 = vmul.f32 %v964_v11, %v634_v48  ;;  %v627_v7 = vadd.f32 %v619_v45, %v611_v22  ;;  %v628_v8 = vadd.f32 %v620_v51, %v612_v39  ;;  %v581_v9 = vsub.f32 %v573_v54, %v1150_v33 }
 0x1f0   : > { %v529_v10 = vmul.f32 0.6931472, %v849_v46  ;;  %v582_v53 = vsub.f32 %v574_v5, %v534_v3  ;;  %v567_v58 = vld [vmem:[#allocation4 + $0x28] sm:$0xff]  ;;  %v568_v28 = vld [vmem:[#allocation4 + $0x30] sm:$0xff]  ;;  %v560_v59 = vsub.f32 %v552_v52, %v536_v6  ;;  %v615_v3 = vmul.f32 0.9, %v559_v57 }
 0x1f1   : > { %650 = vst.msk [vmem:[%s1163_s30] sm:$0xff] %vm245_vm0, %v642_v55  ;;  %v635_v41 = vsub.f32 0.0, %v627_v7  ;;  %v636_v42 = vsub.f32 0.0, %v628_v8  ;;  %v621_v49 = vmul.f32 0.1, %v581_v9  ;;  %v575_v11 = vmul.f32 0.0078125, %v567_v58 }
 0x1f2   : > { %v622_v56 = vmul.f32 0.1, %v582_v53  ;;  %v576_v60 = vmul.f32 0.0078125, %v568_v28  ;;  %v537_v33 = vadd.f32 %v529_v10, %v505_v34 }
 0x1f3   : > { %v643_v61 = vmul.f32 %v966_v12, %v635_v41  ;;  %v644_v62 = vmul.f32 %v968_v13, %v636_v42  ;;  %v629_v63 = vadd.f32 %v621_v49, %v613_v47  ;;  %v583_v0 = vsub.f32 %v575_v11, %v535_v44 }
 0x1f4   : > { %v630_v1 = vadd.f32 %v622_v56, %v614_v26  ;;  %v584_v4 = vsub.f32 %v576_v60, %v536_v6  ;;  %v561_v21 = vsub.f32 %v553_v50, %v537_v33  ;;  %v616_v12 = vmul.f32 0.9, %v560_v59 }
 0x1f5   : > { %v569_v2 = vld [vmem:[#allocation4 + $0x38] sm:$0xff]  ;;  %651 = vst.msk [vmem:[%s1163_s30 + $0x8] sm:$0xff] %vm245_vm0, %v643_v61  ;;  %652 = vst.msk [vmem:[%s1163_s30 + $0x10] sm:$0xff] %vm245_vm0, %v644_v62  ;;  %v637_v19 = vsub.f32 0.0, %v629_v63  ;;  %v623_v20 = vmul.f32 0.1, %v583_v0 }
 0x1f6   : > { %v577_v22 = vmul.f32 0.0078125, %v569_v2  ;;  %v638_v23 = vsub.f32 0.0, %v630_v1  ;;  %v624_v13 = vmul.f32 0.1, %v584_v4  ;;  %v617_v32 = vmul.f32 0.9, %v561_v21 }
 0x1f7   : > { %v645_v24 = vmul.f32 %v970_v14, %v637_v19  ;;  %v631_v25 = vadd.f32 %v623_v20, %v615_v3 }
 0x1f8   : > { %v585_v27 = vsub.f32 %v577_v22, %v537_v33  ;;  %v646_v29 = vmul.f32 %v972_v15, %v638_v23  ;;  %v632_v30 = vadd.f32 %v624_v13, %v616_v12 }
 0x1f9   : > { %653 = vst.msk [vmem:[%s1163_s30 + $0x18] sm:$0xff] %vm245_vm0, %v645_v24  ;;  %v639_v31 = vsub.f32 0.0, %v631_v25 }
 0x1fa   : > { %v625_v35 = vmul.f32 0.1, %v585_v27  ;;  %654 = vst.msk [vmem:[%s1163_s30 + $0x20] sm:$0xff] %vm245_vm0, %v646_v29  ;;  %v640_v36 = vsub.f32 0.0, %v632_v30 }
 0x1fb   : > { %v647_v37 = vmul.f32 %v974_v16, %v639_v31 }
 0x1fc   : > { %v633_v39 = vadd.f32 %v625_v35, %v617_v32  ;;  %v648_v14 = vmul.f32 %v976_v17, %v640_v36 }
 0x1fd   : > { %655 = vst.msk [vmem:[%s1163_s30 + $0x28] sm:$0xff] %vm245_vm0, %v647_v37 }
 0x1fe   : > { %v641_v38 = vsub.f32 0.0, %v633_v39  ;;  %656 = vst.msk [vmem:[%s1163_s30 + $0x30] sm:$0xff] %vm245_vm0, %v648_v14 }
 0x200   : > { %v649_v15 = vmul.f32 %v978_v18, %v641_v38 }
 0x202   : > { %657 = vst.msk [vmem:[%s1163_s30 + $0x38] sm:$0xff] %vm245_vm0, %v649_v15 }
 0x203 PF: > { %s13_s14 = sadd.s32 1, %s872_s14   ;;  %s1206_s12 = smov %s868_s13 }
 0x204   : > { %p10_p5 = scmp.ge.s32.totalorder %s13_s14, 4   ;;  %s1207_s13 = smov %s1209_s15 }
 0x206   :  { %12 = sbr.rel (!%p10_p5) target bundleno = 2 (0x2), region = 76 }

</bundles_post_ra>
